<compile_context>
chip_gen: v5e
topology: v5e:2x2
jax: 0.10.0
libtpu: 0.0.40
codegen_flags: <defaults>
</compile_context>

<pallas_src>
import functools

import jax
import jax.numpy as jnp
from jax.experimental import pallas as pl
from jax.experimental.pallas import tpu as pltpu

_SQRT1_2 = 0.7071067811865476
_BN_EPS = 1e-5
_LANE = 128


def _round_up(x, m):
    return ((x + m - 1) // m) * m


def _gelu(x):
    # exact (erf) GELU, matching torch.nn.GELU() default
    return 0.5 * x * (1.0 + jax.lax.erf(x * _SQRT1_2))


# ----------------------------------------------------------------------------
# pltpu.roll convention probe (expected to match jnp.roll: out[i] = x[i-shift]).
# Resolved once, eagerly, so the conv-tap shifts are robust across jax versions.
# ----------------------------------------------------------------------------
_ROLL_MATCHES_JNP = None


def _roll_probe_kernel(x_ref, o_ref):
    o_ref[...] = pltpu.roll(x_ref[...], 3, 1)


def _roll_matches_jnp():
    global _ROLL_MATCHES_JNP
    if _ROLL_MATCHES_JNP is None:
        x = jnp.arange(8 * 128, dtype=jnp.float32).reshape(8, 128)
        y = pl.pallas_call(
            _roll_probe_kernel,
            out_shape=jax.ShapeDtypeStruct((8, 128), jnp.float32),
        )(x)
        _ROLL_MATCHES_JNP = bool(jnp.array_equal(y, jnp.roll(x, 3, axis=1)))
    return _ROLL_MATCHES_JNP


# ----------------------------------------------------------------------------
# In-kernel building blocks
# ----------------------------------------------------------------------------
def _bn_mask(x, g, be, mask, inv_cnt):
    # training-mode batch stats over interior pixels only; x is zero outside
    # the interior, so no pre-mask is needed for the sums.
    mean = jnp.sum(x, axis=1, keepdims=True) * inv_cnt
    ex2 = jnp.sum(x * x, axis=1, keepdims=True) * inv_cnt
    var = ex2 - mean * mean
    inv = jax.lax.rsqrt(var + _BN_EPS)
    a = g * inv
    b = be - mean * a
    return (x * a + b) * mask       # re-zero the padding ring / tail


def _taps_pack(xn_bf16, wp, mp_pad, roll_sign):
    # 9 conv taps as static lane rolls of the bf16 activation, stacked along
    # the contraction dim: staging row k*Cin+ci holds x[ci, p + delta_k].
    slabs = []
    for kh in range(3):
        for kw in range(3):
            delta = (kh - 1) * wp + (kw - 1)
            shift = (-roll_sign * delta) % mp_pad
            slabs.append(xn_bf16 if shift == 0
                         else pltpu.roll(xn_bf16, shift, 1))
    return jnp.concatenate(slabs, axis=0)   # (9*Cin, Mp) bf16


# ----------------------------------------------------------------------------
# Fused DoubleConv (encoder / top): BN -> conv3x3 -> GELU -> BN -> conv3x3 -> GELU
#   x_ref   : (Cin, Mp) padded-flat activation, zeros outside the interior
#   mask_ref: (1, Mp)   1.0 at interior pixels, 0.0 on the padding ring / tail
#   gX/beX  : (C, 1)    BatchNorm gamma / beta
#   wX      : (Cout, 9*Cin) bf16 packed-tap weights;  bX: (Cout, 1) f32
# ----------------------------------------------------------------------------
def _dc1_kernel(x_ref, mask_ref, g1_ref, be1_ref, w1_ref, b1_ref,
                g2_ref, be2_ref, w2_ref, b2_ref, o_ref,
                *, count, wp, roll_sign):
    mp_pad = x_ref.shape[1]
    mask = mask_ref[...]
    inv_cnt = 1.0 / count

    h = _bn_mask(x_ref[...], g1_ref[...], be1_ref[...], mask, inv_cnt)
    taps = _taps_pack(h.astype(jnp.bfloat16), wp, mp_pad, roll_sign)
    h = jnp.dot(w1_ref[...], taps, preferred_element_type=jnp.float32) + b1_ref[...]
    h = _gelu(h) * mask

    h = _bn_mask(h, g2_ref[...], be2_ref[...], mask, inv_cnt)
    taps = _taps_pack(h.astype(jnp.bfloat16), wp, mp_pad, roll_sign)
    h = jnp.dot(w2_ref[...], taps, preferred_element_type=jnp.float32) + b2_ref[...]
    o_ref[...] = _gelu(h) * mask


def fused_double_conv(x_flat, mask, p, count, wp):
    cout = p["w2"].shape[0]
    mp = x_flat.shape[1]
    kernel = functools.partial(
        _dc1_kernel, count=float(count), wp=wp,
        roll_sign=1 if _roll_matches_jnp() else -1)
    flops = 2 * mp * cout * (p["w1"].shape[1] + p["w2"].shape[1])
    ce = pl.CostEstimate(flops=int(flops),
                         transcendentals=int(2 * cout * mp),
                         bytes_accessed=int(4 * mp * (x_flat.shape[0] + cout)))
    return pl.pallas_call(
        kernel,
        out_shape=jax.ShapeDtypeStruct((cout, mp), jnp.float32),
        cost_estimate=ce,
    )(x_flat, mask, p["g1"], p["be1"], p["w1"], p["b1"],
      p["g2"], p["be2"], p["w2"], p["b2"])


# ----------------------------------------------------------------------------
# Fused decoder DoubleConv with split-K skip concat; optionally fuses the final
# 1x1 out-projection + channel softmax (exact divide) into the same kernel.
#   xa_ref: upsampled slab  (Chalf, Mp)   xb_ref: skip slab (Chalf, Mp)
#   w1_ref: (Cout, 18*Chalf) bf16   (torch cat([up, skip]) column order)
# ----------------------------------------------------------------------------
def _dc2_kernel(xa_ref, xb_ref, mask_ref,
                g1a_ref, be1a_ref, g1b_ref, be1b_ref, w1_ref, b1_ref,
                g2_ref, be2_ref, w2_ref, b2_ref, *rest,
                count, wp, roll_sign, fuse_out, apply_softmax):
    if fuse_out:
        ow_ref, ob_ref, o_ref = rest
    else:
        (o_ref,) = rest
    mp_pad = xa_ref.shape[1]
    mask = mask_ref[...]
    inv_cnt = 1.0 / count

    # BN of the (virtually) concatenated input == per-half BN (per-channel stats)
    ha = _bn_mask(xa_ref[...], g1a_ref[...], be1a_ref[...], mask, inv_cnt)
    hb = _bn_mask(xb_ref[...], g1b_ref[...], be1b_ref[...], mask, inv_cnt)
    taps = jnp.concatenate(
        [_taps_pack(ha.astype(jnp.bfloat16), wp, mp_pad, roll_sign),
         _taps_pack(hb.astype(jnp.bfloat16), wp, mp_pad, roll_sign)], axis=0)
    h = jnp.dot(w1_ref[...], taps, preferred_element_type=jnp.float32) + b1_ref[...]
    h = _gelu(h) * mask

    h = _bn_mask(h, g2_ref[...], be2_ref[...], mask, inv_cnt)
    taps = _taps_pack(h.astype(jnp.bfloat16), wp, mp_pad, roll_sign)
    h = jnp.dot(w2_ref[...], taps, preferred_element_type=jnp.float32) + b2_ref[...]
    h = _gelu(h) * mask

    if fuse_out:
        out = jnp.dot(ow_ref[...], h.astype(jnp.bfloat16),
                      preferred_element_type=jnp.float32) + ob_ref[...]
        if apply_softmax:
            m = jnp.max(out, axis=0, keepdims=True)
            e = jnp.exp(out - m)
            out = e / jnp.sum(e, axis=0, keepdims=True)   # exact divide
        o_ref[...] = out
    else:
        o_ref[...] = h


def fused_up_double_conv(xa_flat, xb_flat, mask, p, count, wp,
                         out_w=None, out_b=None, apply_softmax=False):
    fuse_out = out_w is not None
    cout = p["w2"].shape[0]
    mp = xa_flat.shape[1]
    kernel = functools.partial(
        _dc2_kernel, count=float(count), wp=wp,
        roll_sign=1 if _roll_matches_jnp() else -1,
        fuse_out=fuse_out, apply_softmax=apply_softmax)
    flops = 2 * mp * cout * (p["w1"].shape[1] + p["w2"].shape[1])
    out_c = cout
    if fuse_out:
        flops += 2 * mp * out_w.shape[0] * out_w.shape[1]
        out_c = out_w.shape[0]
    ce = pl.CostEstimate(
        flops=int(flops), transcendentals=int(2 * cout * mp),
        bytes_accessed=int(4 * mp * (xa_flat.shape[0] + xb_flat.shape[0] + out_c)))
    args = [xa_flat, xb_flat, mask, p["g1a"], p["be1a"], p["g1b"], p["be1b"],
            p["w1"], p["b1"], p["g2"], p["be2"], p["w2"], p["b2"]]
    if fuse_out:
        args += [out_w, out_b]
    return pl.pallas_call(
        kernel,
        out_shape=jax.ShapeDtypeStruct((out_c, mp), jnp.float32),
        cost_estimate=ce,
    )(*args)


# ----------------------------------------------------------------------------
# ConvTranspose2d(k=2, s=2) as one lane-dense matmul (pixel interleave is glue)
# ----------------------------------------------------------------------------
def _matmul_bias_kernel(x_ref, w_ref, b_ref, o_ref):
    o_ref[...] = jnp.dot(w_ref[...], x_ref[...].astype(jnp.bfloat16),
                         preferred_element_type=jnp.float32) + b_ref[...]


def upconv2x2(x_flat, w_up, b_up):
    return pl.pallas_call(
        _matmul_bias_kernel,
        out_shape=jax.ShapeDtypeStruct((w_up.shape[0], x_flat.shape[1]),
                                       jnp.float32),
    )(x_flat, w_up, b_up)


# ----------------------------------------------------------------------------
# Layout glue (plain JAX): zero-pad/flatten, interior extraction, max-pool 2x2,
# 2x2 pixel interleave for the transposed conv.
# TODO(synk): max_pool2d and the 2x2 pixel interleave stay as tiny JAX glue;
# fusing them in-kernel needs reshapes across non-128-aligned flat dims (or an
# integer div/mod iota mask), which is fragile to lower — revisit when gridding.
# ----------------------------------------------------------------------------
def _pad_flatten(x_cnhw):
    c, n, h, w = x_cnhw.shape
    xp = jnp.pad(x_cnhw, ((0, 0), (0, 0), (1, 1), (1, 1)))
    mp = n * (h + 2) * (w + 2)
    xf = xp.reshape(c, mp)
    return jnp.pad(xf, ((0, 0), (0, _round_up(mp, _LANE) - mp)))


def _interior(x_flat, n, h, w):
    c = x_flat.shape[0]
    mp = n * (h + 2) * (w + 2)
    return x_flat[:, :mp].reshape(c, n, h + 2, w + 2)[:, :, 1:h + 1, 1:w + 1]


def _interior_mask(n, h, w):
    return _pad_flatten(jnp.ones((1, n, h, w), jnp.float32))


def maxpool2(x_flat, n, h, w):
    c = x_flat.shape[0]
    x = _interior(x_flat, n, h, w)
    x = x.reshape(c, n, h // 2, 2, w // 2, 2).max(axis=(3, 5))
    return _pad_flatten(x)


def _interleave2x2(y_flat, cout, n, h, w):
    y = _interior(y_flat, n, h, w)                # (4*cout, n, h, w)
    y = y.reshape(2, 2, cout, n, h, w)
    y = jnp.transpose(y, (2, 3, 4, 0, 5, 1))      # (cout, n, h, di, w, dj)
    return y.reshape(cout, n, 2 * h, 2 * w)


# ----------------------------------------------------------------------------
# Parameter init (weights pre-laid-out for the kernels at init time)
# ----------------------------------------------------------------------------
def _pack_w3x3(w_t):
    # torch (Cout, Cin, kh, kw) -> (Cout, 9*Cin), column = (kh*3+kw)*Cin + ci
    cout, cin = w_t.shape[0], w_t.shape[1]
    return jnp.transpose(w_t, (0, 2, 3, 1)).reshape(cout, 9 * cin)


def _prep_double_conv(k1, k2, cin, cout, cin_pad=None):
    cin_pad = cin if cin_pad is None else cin_pad
    w1_t = jax.random.normal(k1, (cout, cin, 3, 3), jnp.float32) * 0.05
    w2_t = jax.random.normal(k2, (cout, cout, 3, 3), jnp.float32) * 0.05
    if cin_pad > cin:
        w1_t = jnp.pad(w1_t, ((0, 0), (0, cin_pad - cin), (0, 0), (0, 0)))
    return {
        "g1": jnp.ones((cin_pad, 1), jnp.float32),
        "be1": jnp.zeros((cin_pad, 1), jnp.float32),
        "w1": _pack_w3x3(w1_t).astype(jnp.bfloat16),
        "b1": jnp.zeros((cout, 1), jnp.float32),
        "g2": jnp.ones((cout, 1), jnp.float32),
        "be2": jnp.zeros((cout, 1), jnp.float32),
        "w2": _pack_w3x3(w2_t).astype(jnp.bfloat16),
        "b2": jnp.zeros((cout, 1), jnp.float32),
    }


def _prep_double_conv_split(k1, k2, chalf, cout):
    # decoder DoubleConv(2*chalf, cout): first conv weights split at init into
    # [up half | skip half] packed blocks for the split-K kernel.
    w1_t = jax.random.normal(k1, (cout, 2 * chalf, 3, 3), jnp.float32) * 0.05
    w2_t = jax.random.normal(k2, (cout, cout, 3, 3), jnp.float32) * 0.05
    w1 = jnp.concatenate([_pack_w3x3(w1_t[:, :chalf]),
                          _pack_w3x3(w1_t[:, chalf:])], axis=1)
    return {
        "g1a": jnp.ones((chalf, 1), jnp.float32),
        "be1a": jnp.zeros((chalf, 1), jnp.float32),
        "g1b": jnp.ones((chalf, 1), jnp.float32),
        "be1b": jnp.zeros((chalf, 1), jnp.float32),
        "w1": w1.astype(jnp.bfloat16),
        "b1": jnp.zeros((cout, 1), jnp.float32),
        "g2": jnp.ones((cout, 1), jnp.float32),
        "be2": jnp.zeros((cout, 1), jnp.float32),
        "w2": _pack_w3x3(w2_t).astype(jnp.bfloat16),
        "b2": jnp.zeros((cout, 1), jnp.float32),
    }


def init_unet_params(key, dim_in=3, dim_out=3, depth=2, base_dim=8):
    _roll_matches_jnp()   # resolve pltpu.roll convention eagerly (outside jit)
    n_keys = 2 * depth + 2 + 3 * depth + 1
    keys = iter(jax.random.split(key, n_keys))

    dim_in_pad = _round_up(max(dim_in, 16), 16)   # bf16 sublane packing = 16
    params = {"encoder": [], "decoder": []}
    cur = dim_in
    for i in range(depth):
        new = base_dim * 2 ** i
        params["encoder"].append(
            _prep_double_conv(next(keys), next(keys), cur, new,
                              cin_pad=dim_in_pad if i == 0 else None))
        cur = new
    params["top"] = _prep_double_conv(next(keys), next(keys),
                                      base_dim * 2 ** (depth - 1),
                                      base_dim * 2 ** depth)
    for i in range(depth):
        cin = base_dim * 2 ** (depth - i)
        cout = base_dim * 2 ** (depth - i - 1)
        up_t = jax.random.normal(next(keys), (cin, cout, 2, 2), jnp.float32) * 0.05
        # torch (Cin, Cout, dh, dw) -> ((dh*2+dw)*Cout + co, Cin)
        up_w = jnp.transpose(up_t, (2, 3, 1, 0)).reshape(4 * cout, cin)
        params["decoder"].append({
            "up_w": up_w.astype(jnp.bfloat16),
            "up_b": jnp.zeros((4 * cout, 1), jnp.float32),
            "conv": _prep_double_conv_split(next(keys), next(keys), cout, cout),
        })
    out_t = jax.random.normal(next(keys), (dim_out, base_dim, 1, 1), jnp.float32) * 0.05
    params["out_w"] = out_t.reshape(dim_out, base_dim).astype(jnp.bfloat16)
    params["out_b"] = jnp.zeros((dim_out, 1), jnp.float32)
    return params


# ----------------------------------------------------------------------------
# Forward
# ----------------------------------------------------------------------------
def unet_forward(x_nchw, params, logits=False):
    n, c_in, h, w = x_nchw.shape
    assert len(params["decoder"]) >= 1, "depth >= 1 required"
    x = jnp.transpose(x_nchw, (1, 0, 2, 3))                   # (C, N, H, W)
    cin_pad = params["encoder"][0]["g1"].shape[0]
    if cin_pad > c_in:
        x = jnp.pad(x, ((0, cin_pad - c_in), (0, 0), (0, 0), (0, 0)))
    xf = _pad_flatten(x)

    latents = []
    for p in params["encoder"]:
        xf = fused_double_conv(xf, _interior_mask(n, h, w), p, n * h * w, w + 2)
        latents.append((xf, h, w))
        xf = maxpool2(xf, n, h, w)
        h, w = h // 2, w // 2

    xf = fused_double_conv(xf, _interior_mask(n, h, w), params["top"],
                           n * h * w, w + 2)

    num_dec = len(params["decoder"])
    out = None
    for i, p in enumerate(params["decoder"]):
        skip_f, sh, sw = latents[-(i + 1)]
        up = upconv2x2(xf, p["up_w"], p["up_b"])               # (4*Cout, Mp_low)
        cout = p["up_w"].shape[0] // 4
        xs = _interleave2x2(up, cout, n, h, w)                 # (Cout, N, 2H, 2W)
        h, w = 2 * h, 2 * w
        assert (h, w) == (sh, sw)
        xa = _pad_flatten(xs)
        mask = _interior_mask(n, h, w)
        if i == num_dec - 1:
            # last decoder level: fuse 1x1 out-projection + softmax in-kernel
            out = fused_up_double_conv(xa, skip_f, mask, p["conv"], n * h * w,
                                       w + 2, out_w=params["out_w"],
                                       out_b=params["out_b"],
                                       apply_softmax=not logits)
        else:
            xf = fused_up_double_conv(xa, skip_f, mask, p["conv"],
                                      n * h * w, w + 2)

    y = _interior(out, n, h, w)                                # (dimOut, N, H, W)
    return jnp.transpose(y, (1, 0, 2, 3))                      # back to NCHW


# ----------------------------------------------------------------------------
if __name__ == "__main__":
    key = jax.random.PRNGKey(0)
    pkey, xkey = jax.random.split(key)

    # Small UNet: depth=2, baseDim=8, input (N=2, C=3, H=16, W=16)
    DEPTH, BASE = 2, 8
    params = init_unet_params(pkey, dim_in=3, dim_out=3, depth=DEPTH, base_dim=BASE)
    x = jax.random.normal(xkey, (2, 3, 16, 16), jnp.float32)

    fwd = jax.jit(functools.partial(unet_forward, logits=False))
    out = jax.block_until_ready(fwd(x, params))

    assert out.shape == (2, 3, 16, 16), out.shape
    assert bool(jnp.all(jnp.isfinite(out)))
    # softmax over the channel dim must sum to ~1 (exact divide in-kernel)
    ch_sum = jnp.sum(out, axis=1)
    assert bool(jnp.allclose(ch_sum, jnp.ones_like(ch_sum), atol=1e-3)), "softmax check failed"

    print("KERNEL_OK")
</pallas_src>

<mosaic_0001>
module attributes {stable_mosaic.version = 11 : i64} {
  func.func @_roll_probe_kernel(%arg0: memref<8x128xf32, #tpu.memory_space<vmem>>, %arg1: memref<8x128xf32, #tpu.memory_space<vmem>>) attributes {dimension_semantics = [], scalar_prefetch = 0 : i64, scratch_operands = 0 : i64, tpu.core_type = #tpu.core_type<tc>} {
    %c0 = arith.constant 0 : index
    %c0_0 = arith.constant 0 : index
    %0 = vector.load %arg0[%c0, %c0_0] : memref<8x128xf32, #tpu.memory_space<vmem>>, vector<8x128xf32>
    %c3_i32 = arith.constant 3 : i32
    %1 = tpu.dynamic_rotate %0 by %c3_i32 dim 1 : vector<8x128xf32>, i32 -> vector<8x128xf32>
    %c0_1 = arith.constant 0 : index
    %c0_2 = arith.constant 0 : index
    %2 = vector.load %arg1[%c0_1, %c0_2] : memref<8x128xf32, #tpu.memory_space<vmem>>, vector<8x128xf32>
    tpu.vector_store %arg1[%c0_1, %c0_2], %1 {strides = array<i32>} : memref<8x128xf32, #tpu.memory_space<vmem>>, vector<8x128xf32>,
    return
  }
}

</mosaic_0001>

<bundles_post_ra>
// kernel: tpu_custom_call.1
= control target key start
LH: loop header
LB: loop body
LE: loop exit
PB: predicated region body
PF: predicated region fallthrough
CT: control target
= control target key end

     0   :  { %6 = vsyncpa [#allocation3], 0  ;;  %s118_s0 = inlined_call_operand.hbm [shape: f32[8,128], index: 0, kind: input, shape index: {}]   ;;  %s119_s1 = inlined_call_operand.hbm [shape: f32[8,128], index: 1, kind: output, shape index: {}]  }
   0x1   :  { %7 = vsyncpa [#allocation4], 0  ;;  %s13_s8 = sshll.u32 %s118_s0, 4  ;;  %s99_s9 = smov [#allocation2]   ;;  %s14_s8 = int_to_ptr.hbm [resolvable:$true] %s13_s8 }
   0x2   :  { %s15_s10 = sshll.u32 %s99_s9, 4  ;;  %s16_s10 = int_to_ptr.vmem [resolvable:$true] %s15_s10 }
   0x3   :  { %18 = dma.hbm_to_vmem [thread:$0]  %s14_s8, 128, %s16_s10, [#allocation3]  }
   0x4   :  { %95 = dma.done.wait [#allocation3], 128  }
   0x5   :  { %96 = vsyncadd [#allocation3], 4294967168  ;;  %v23_v0 = vld [vmem:[#allocation2] sm:$0xff]  ;;  %s100_s11 = smov 3   ;;  %s101_s12 = smov [#allocation5]  }
   0x6   :  { %24 = vrot.lane.b32.xlu0 %v23_v0, %s100_s11  ;;  %s32_s13 = sshll.u32 %s101_s12, 4  ;;  %s34_s16 = sshll.u32 %s119_s1, 4  ;;  %s33_s13 = int_to_ptr.vmem [resolvable:$true] %s32_s13  ;;  %s35_s16 = int_to_ptr.hbm [resolvable:$true] %s34_s16 }
  0x78   :  { %v25_v1 = vpop.permute.xlu0 %24 }
  0x79   :  { %26 = vst [vmem:[#allocation5] sm:$0xff] %v25_v1 }
  0x7a   :  { %37 = dma.vmem_to_hbm [thread:$0]  %s33_s13, 128, %s35_s16, [#allocation4]  }
  0x7b   :  { %97 = dma.done.wait [#allocation4], 128  }
  0x7c   :  { %98 = vsyncadd [#allocation4], 4294967168 }
  0x7d   :  { %42 = vsyncpa [#allocation3], 1 }
  0x7e   :  { %43 = vsyncpa [#allocation4], 1 }

</bundles_post_ra>
